<compile_context>
chip_gen: v7x
topology: tpu7x:2x2x1
jax: 0.10.0
libtpu: 0.0.40
codegen_flags: <defaults>
</compile_context>

<pallas_src>
import math

import jax
import jax.numpy as jnp
from jax.experimental import pallas as pl
from jax.experimental.pallas import tpu as pltpu


def _add_pe_kernel(x_ref, pe_ref, o_ref):
    # x_ref:  (tB, tS, D) tile of the input
    # pe_ref: (tB, 1, D)  positional-encoding rows for this batch tile
    # o_ref:  (tB, tS, D)
    o_ref[...] = (x_ref[...] + pe_ref[...]).astype(o_ref.dtype)  # sublane broadcast over seq


def positional_encoding_forward(x: jax.Array, pe: jax.Array,
                                *, target_block_bytes: int = 2 << 20) -> jax.Array:
    """out = x + pe[:B].  x: [B, S, D]; pe: [max_len, 1, D] with max_len >= B."""
    B, S, D = x.shape
    assert pe.ndim == 3 and pe.shape[1] == 1 and pe.shape[2] == D
    assert pe.shape[0] >= B

    pe = pe.astype(x.dtype)

    row_bytes = D * jnp.dtype(x.dtype).itemsize
    total_bytes = B * S * row_bytes

    if total_bytes <= (512 << 10):
        # Tiny input: single grid step over the whole array so the ~0.35 us
        # per-step overhead is paid exactly once.
        tB, tS = B, S
    else:
        # One batch row per step; tile the seq axis into ~target_block_bytes
        # blocks (multiple of 8 sublanes) so the software pipeline has many
        # steps to hide DMA behind, while the double-buffered in+out blocks
        # (~4 * 2 MiB) stay far inside v7x's 64 MiB VMEM and v5e's default
        # scoped limit.
        tB = 1
        tS = (target_block_bytes // row_bytes) // 8 * 8
        tS = max(tS, 8)
        tS = min(tS, S)  # falls back to full S (legal full-dim block) for small S

    grid = (pl.cdiv(B, tB), pl.cdiv(S, tS))

    return pl.pallas_call(
        _add_pe_kernel,
        out_shape=jax.ShapeDtypeStruct((B, S, D), x.dtype),
        grid_spec=pltpu.PrefetchScalarGridSpec(
            num_scalar_prefetch=0,
            grid=grid,
            in_specs=[
                # x / out: lane-dense blocks, seq tiled.
                pl.BlockSpec((tB, tS, D), lambda b, s: (b, s, 0)),
                # pe is indexed directly (no pe[:B] wrapper slice). Its block
                # index is constant across the seq-tile axis, so the tiny
                # (tB, 1, D) row is NOT re-DMA'd every grid step.
                pl.BlockSpec((tB, 1, D), lambda b, s: (b, 0, 0)),
            ],
            out_specs=pl.BlockSpec((tB, tS, D), lambda b, s: (b, s, 0)),
        ),
        compiler_params=pltpu.CompilerParams(
            # Both axes are independent -> shardable across v7x's 2 TensorCores.
            dimension_semantics=("parallel", "parallel"),
            # Explicit limit: larger than v5e's 16 MiB default, safe on all gens.
            vmem_limit_bytes=32 << 20,
        ),
    )(x, pe)


def make_pe_buffer(d_model: int, max_len: int = 1024) -> jax.Array:
    """Deterministic sin/cos positional-encoding buffer, shape [max_len, 1, d_model]."""
    position = jnp.arange(max_len, dtype=jnp.float32)[:, None]          # [max_len, 1]
    div_term = jnp.exp(
        jnp.arange(0, d_model, 2, dtype=jnp.float32)
        * (-math.log(10000.0) / d_model)
    )                                                                    # [d_model//2]
    sin_part = jnp.sin(position * div_term)                             # [max_len, d_model//2]
    cos_part = jnp.cos(position * div_term)                             # [max_len, d_model//2]
    pe = jnp.zeros((max_len, d_model), dtype=jnp.float32)
    pe = pe.at[:, 0::2].set(sin_part)
    pe = pe.at[:, 1::2].set(cos_part)
    return pe[:, None, :]                                               # [max_len, 1, d_model]


if __name__ == "__main__":
    max_len = 1024
    k1, k2 = jax.random.split(jax.random.PRNGKey(0))

    # Small, lane-dense demo shape (D multiple of 128 -> unmasked vst stores).
    B, S, D = 2, 8, 128
    pe = make_pe_buffer(D, max_len)
    x = jax.random.normal(k1, (B, S, D), dtype=jnp.float32)
    out = jax.block_until_ready(positional_encoding_forward(x, pe))
    ref = x + pe[:B]
    assert out.shape == (B, S, D)
    assert jnp.allclose(out, ref, atol=1e-6, rtol=1e-6)

    # Moderately larger shape to exercise the seq-tiled pipelined path
    # (grid = (B, S/tS) with ~2 MiB blocks).
    B2, S2, D2 = 2, 4096, 256
    pe2 = make_pe_buffer(D2, max_len)
    x2 = jax.random.normal(k2, (B2, S2, D2), dtype=jnp.float32)
    out2 = jax.block_until_ready(positional_encoding_forward(x2, pe2))
    ref2 = x2 + pe2[:B2]
    assert out2.shape == (B2, S2, D2)
    assert jnp.allclose(out2, ref2, atol=1e-6, rtol=1e-6)

    print("KERNEL_OK")
</pallas_src>

<mosaic_0001>
module attributes {stable_mosaic.version = 11 : i64} {
  func.func @_add_pe_kernel(%arg0: i32, %arg1: i32, %arg2: memref<2x8x128xf32, #tpu.memory_space<vmem>>, %arg3: memref<2x1x128xf32, #tpu.memory_space<vmem>>, %arg4: memref<2x8x128xf32, #tpu.memory_space<vmem>>) attributes {dimension_semantics = [#tpu.dimension_semantics<parallel>, #tpu.dimension_semantics<parallel>], iteration_bounds = array<i64: 1, 1>, scalar_prefetch = 0 : i64, scratch_operands = 0 : i64, tpu.core_type = #tpu.core_type<tc>, window_params = [{transform_indices = @transform_0, window_bounds = array<i64: 2, 8, 128>}, {transform_indices = @transform_1, window_bounds = array<i64: 2, 1, 128>}, {transform_indices = @transform_2, window_bounds = array<i64: 2, 8, 128>}]} {
    %c0 = arith.constant 0 : index
    %c0_0 = arith.constant 0 : index
    %c0_1 = arith.constant 0 : index
    %0 = vector.load %arg2[%c0, %c0_0, %c0_1] : memref<2x8x128xf32, #tpu.memory_space<vmem>>, vector<2x8x128xf32>
    %c0_2 = arith.constant 0 : index
    %c0_3 = arith.constant 0 : index
    %c0_4 = arith.constant 0 : index
    %1 = vector.load %arg3[%c0_2, %c0_3, %c0_4] : memref<2x1x128xf32, #tpu.memory_space<vmem>>, vector<2x1x128xf32>
    %2 = vector.broadcast %1 : vector<2x1x128xf32> to vector<2x8x128xf32>
    %3 = arith.addf %0, %2 : vector<2x8x128xf32>
    %c0_5 = arith.constant 0 : index
    %c0_6 = arith.constant 0 : index
    %c0_7 = arith.constant 0 : index
    %4 = vector.load %arg4[%c0_5, %c0_6, %c0_7] : memref<2x8x128xf32, #tpu.memory_space<vmem>>, vector<2x8x128xf32>
    tpu.vector_store %arg4[%c0_5, %c0_6, %c0_7], %3 {strides = array<i32>} : memref<2x8x128xf32, #tpu.memory_space<vmem>>, vector<2x8x128xf32>,
    return
  }
  func.func @transform_0(%arg0: i32, %arg1: i32) -> (i32, i32, i32) {
    %c0_i32 = arith.constant 0 : i32
    %c0_i32_0 = arith.constant 0 : i32
    return %arg0, %arg1, %c0_i32 : i32, i32, i32
  }
  func.func @transform_1(%arg0: i32, %arg1: i32) -> (i32, i32, i32) {
    %c0_i32 = arith.constant 0 : i32
    %c0_i32_0 = arith.constant 0 : i32
    %c0_i32_1 = arith.constant 0 : i32
    return %arg0, %c0_i32, %c0_i32_0 : i32, i32, i32
  }
  func.func @transform_2(%arg0: i32, %arg1: i32) -> (i32, i32, i32) {
    %c0_i32 = arith.constant 0 : i32
    %c0_i32_0 = arith.constant 0 : i32
    return %arg0, %arg1, %c0_i32 : i32, i32, i32
  }
}

</mosaic_0001>

<bundles_post_ra>
// kernel: tpu_custom_call.1
= control target key start
LH: loop header
LB: loop body
LE: loop exit
PB: predicated region body
PF: predicated region fallthrough
CT: control target
= control target key end

     0   :  { %7 = vsyncpa [#allocation3], 0  ;;  %s226_s0 = inlined_call_operand.hbm [shape: f32[2,8,128], index: 0, kind: input, shape index: {}]   ;;  %s227_s1 = inlined_call_operand.hbm [shape: f32[1024,1,128], index: 1, kind: input, shape index: {}]   ;;  %s228_s2 = inlined_call_operand.hbm [shape: f32[2,8,128], index: 2, kind: output, shape index: {}]  }
   0x1   :  { %8 = vsyncpa [#allocation6], 0 }
   0x2   :  { %9 = vsyncpa [#allocation4], 0  ;;  %s159_s9 = smov [#allocation2]   ;;  %s87_s13 = scalar_lea.hbm %s226_s0, 256 }
   0x3   :  { %s15_s10 = sshll.u32 %s159_s9, 4  ;;  %p88_p0 = scmp.ne.s32.totalorder %s226_s0, %s87_s13  ;;  %s16_s10 = int_to_ptr.vmem [resolvable:$true] %s15_s10 }
   0x4   :  { %p91_p1 = scmp.lt.u32.totalorder %s87_s13, %s226_s0 }
   0x6   :  { %p93_p2 = pnand %p91_p1, %p88_p0 }
   0x8   :  { %96 = shalt.err (!%p93_p2)
}
   0x9   :  { %s97_s18 = scalar_lea.vmem %s16_s10, 256  ;;  %p102_p4 = scmp.lt.s32.totalorder %s16_s10, %s16_s10 }
   0xa   :  { %p98_p3 = scmp.ne.s32.totalorder %s16_s10, %s97_s18  ;;  %p103_p5 = scmp.lt.s32.totalorder %s97_s18, %s97_s18 }
   0xc   :  { %p104_p6 = por %p103_p5, %p102_p4 }
   0xe   :  { %p105_p7 = pnand %p104_p6, %p98_p3 }
  0x10   :  { %108 = shalt.err (!%p105_p7)
}
  0x11   :  { %s160_s19 = smov 128   ;;  %s161_s20 = smov 8  }
  0x12   :  { %21 = dma.hbm_to_vmem [thread:$0]  %s226_s0, 256, %s16_s10, [#allocation3], %s160_s19, %s160_s19, %s161_s20  }
  0x13   :  { %s162_s23 = smov [#allocation5]   ;;  %s109_s27 = scalar_lea.hbm %s227_s1, 32 }
  0x14   :  { %s27_s24 = sshll.u32 %s162_s23, 4  ;;  %p110_p8 = scmp.ne.s32.totalorder %s227_s1, %s109_s27  ;;  %s28_s24 = int_to_ptr.vmem [resolvable:$true] %s27_s24 }
  0x15   :  { %s111_s4 = scalar_lea.hbm %s227_s1, 16384  ;;  %p113_p10 = scmp.lt.u32.totalorder %s109_s27, %s227_s1 }
  0x16   :  { %p112_p9 = scmp.lt.u32.totalorder %s111_s4, %s109_s27 }
  0x18   :  { %p114_p11 = por %p113_p10, %p112_p9 }
  0x1a   :  { %p115_p12 = pnand %p114_p11, %p110_p8 }
  0x1c   :  { %118 = shalt.err (!%p115_p12)
}
  0x1d   :  { %s119_s0 = scalar_lea.vmem %s28_s24, 32  ;;  %p124_p0 = scmp.lt.s32.totalorder %s28_s24, %s28_s24 }
  0x1e   :  { %p120_p13 = scmp.ne.s32.totalorder %s28_s24, %s119_s0  ;;  %p125_p1 = scmp.lt.s32.totalorder %s119_s0, %s119_s0 }
  0x20   :  { %p126_p2 = por %p125_p1, %p124_p0 }
  0x22   :  { %p127_p3 = pnand %p126_p2, %p120_p13 }
  0x24   :  { %130 = shalt.err (!%p127_p3)
}
  0x25   :  { %s163_s7 = smov 16   ;;  %s164_s8 = smov 1  }
  0x26   :  { %33 = dma.hbm_to_vmem [thread:$0]  %s227_s1, 32, %s28_s24, [#allocation6], %s163_s7, %s163_s7, %s164_s8  }
  0x27   :  { %153 = dma.done.wait [#allocation3], 256  }
  0x28   :  { %154 = vsyncadd [#allocation3], 4294967040 }
  0x29   :  { %155 = dma.done.wait [#allocation6], 32  }
  0x2a   :  { %156 = vsyncadd [#allocation6], 4294967264  ;;  %s165_s11 = smov [#allocation7]   ;;  %v40_v0 = vld [vmem:[#allocation2] sm:$0xff]  ;;  %v78_v1 = vld [vmem:[#allocation5] ss:$0 sm:$0xff] }
  0x2b   :  { %s65_s12 = sshll.u32 %s165_s11, 4  ;;  %v41_v2 = vld [vmem:[#allocation2 + $0x8] sm:$0xff]  ;;  %v56_v3 = vadd.f32 %v78_v1, %v40_v0  ;;  %v79_v4 = vld [vmem:[#allocation5 + $0x1] ss:$0 sm:$0xff]  ;;  %s66_s12 = int_to_ptr.vmem [resolvable:$true] %s65_s12 }
  0x2c   :  { %v57_v5 = vadd.f32 %v79_v4, %v41_v2  ;;  %s131_s13 = scalar_lea.vmem %s66_s12, 256  ;;  %p136_p5 = scmp.lt.s32.totalorder %s66_s12, %s66_s12 }
  0x2d   :  { %58 = vst [vmem:[#allocation7] sm:$0xff] %v56_v3  ;;  %p132_p4 = scmp.ne.s32.totalorder %s66_s12, %s131_s13  ;;  %p137_p6 = scmp.lt.s32.totalorder %s131_s13, %s131_s13 }
  0x2e   :  { %59 = vst [vmem:[#allocation7 + $0x8] sm:$0xff] %v57_v5 }
  0x2f   :  { %p138_p7 = por %p137_p6, %p136_p5 }
  0x31   :  { %p139_p8 = pnand %p138_p7, %p132_p4 }
  0x33   :  { %142 = shalt.err (!%p139_p8)
}
  0x34   :  { %s143_s15 = scalar_lea.hbm %s228_s2, 256 }
  0x35   :  { %p144_p9 = scmp.ne.s32.totalorder %s228_s2, %s143_s15  ;;  %p147_p10 = scmp.lt.u32.totalorder %s143_s15, %s228_s2 }
  0x37   :  { %p149_p11 = pnand %p147_p10, %p144_p9 }
  0x39   :  { %152 = shalt.err (!%p149_p11)
}
  0x3a   :  { %71 = dma.vmem_to_hbm [thread:$0]  %s66_s12, 256, %s228_s2, [#allocation4], %s160_s19, %s160_s19, %s161_s20  }
  0x3b   :  { %157 = dma.done.wait [#allocation4], 256  }
  0x3c   :  { %158 = vsyncadd [#allocation4], 4294967040 }
  0x3d   :  { %75 = vsyncpa [#allocation3], 1 }
  0x3e   :  { %76 = vsyncpa [#allocation6], 1 }
  0x3f   :  { %77 = vsyncpa [#allocation4], 1 }

</bundles_post_ra>
